<compile_context>
chip_gen: v7x
topology: tpu7x:2x2x1
jax: 0.10.0
libtpu: 0.0.40
codegen_flags: <defaults>
</compile_context>

<pallas_src>
import functools

import jax
import jax.numpy as jnp
from jax.experimental import pallas as pl
from jax.experimental.pallas import tpu as pltpu


def _project3d_kernel(p_smem, pts_ref, pix_ref, raw_ref, *, eps, sx, sy):
    # p_smem : (B, 12) f32 in SMEM -- row-major (k @ tform)[:3, :] per batch.
    # pts_ref: (1, 4, S, 128)      -- tile of homogeneous 3D points.
    # outputs: (1, 2, S, 128)      -- normalized / raw pixel coordinates.
    b = pl.program_id(0)

    x = pts_ref[0, 0]      # (S, 128)
    y = pts_ref[0, 1]
    z = pts_ref[0, 2]
    wh = pts_ref[0, 3]

    # cam_r = p[r,0]*x + p[r,1]*y + p[r,2]*z + p[r,3]*wh
    # K=4 contraction as scalar * (S,128) VPU work (MXU would be wasted here).
    def row(r):
        return (p_smem[b, 4 * r + 0] * x
                + p_smem[b, 4 * r + 1] * y
                + p_smem[b, 4 * r + 2] * z
                + p_smem[b, 4 * r + 3] * wh)

    cx = row(0)
    cy = row(1)
    cz = row(2)

    inv = 1.0 / (cz + eps)          # single exact shared reciprocal
    raw_x = cx * inv
    raw_y = cy * inv

    raw_ref[0, 0] = raw_x
    raw_ref[0, 1] = raw_y

    # pix = (raw / (dim-1) - 0.5) * 2  ==  raw * (2/(dim-1)) - 1
    pix_ref[0, 0] = raw_x * sx - 1.0
    pix_ref[0, 1] = raw_y * sy - 1.0


def _pick_rows(total_rows, max_rows=256):
    """Rows-of-128 per tile: whole extent if small, else a multiple of 8."""
    if total_rows <= max_rows:
        return total_rows
    start = max_rows - (max_rows % 8)
    for s in range(start, 0, -8):
        if total_rows % s == 0:
            return s
    return total_rows  # fallback: single big block


def project3d(points, k, tform, size, eps=1e-7, rows_per_tile=None):
    """Pallas implementation of Project3D.forward.

    Args:
      points: (B, 4, N) float32, N == h * w, N % 128 == 0
      k:      (B, 4, 4) float32
      tform:  (B, 4, 4) float32
      size:   (h, w)
    Returns:
      (pix_coords, raw_pix_coords), each (B, h, w, 2) float32.
    """
    h, w = size
    B, four, N = points.shape
    assert four == 4 and N == h * w and N % 128 == 0

    R = N // 128
    S = _pick_rows(R) if rows_per_tile is None else rows_per_tile
    assert R % S == 0

    # Tiny (B,4,4)@(B,4,4) product in plain-JAX glue; flattened to (B, 12) and
    # prefetched into SMEM.  The hot path (projection of N = h*w points plus
    # per-pixel normalization) is the kernel.
    p = jnp.matmul(k, tform)[:, :3, :].reshape(B, 12)        # (B, 12)

    pts4 = points.reshape(B, 4, R, 128)                      # dense (R,128) planes

    kernel = functools.partial(
        _project3d_kernel,
        eps=float(eps),
        sx=2.0 / (w - 1),
        sy=2.0 / (h - 1),
    )

    pix4, raw4 = pl.pallas_call(
        kernel,
        out_shape=(jax.ShapeDtypeStruct((B, 2, R, 128), points.dtype),
                   jax.ShapeDtypeStruct((B, 2, R, 128), points.dtype)),
        grid_spec=pltpu.PrefetchScalarGridSpec(
            num_scalar_prefetch=1,                           # p -> SMEM
            grid=(B, R // S),
            in_specs=[
                pl.BlockSpec((1, 4, S, 128), lambda b, n, p: (b, 0, n, 0)),
            ],
            out_specs=[
                pl.BlockSpec((1, 2, S, 128), lambda b, n, p: (b, 0, n, 0)),
                pl.BlockSpec((1, 2, S, 128), lambda b, n, p: (b, 0, n, 0)),
            ],
        ),
        compiler_params=pltpu.CompilerParams(
            dimension_semantics=("parallel", "parallel")),
    )(p, pts4)

    # Match the torch module's .view(-1, 2, h, w).permute(0, 2, 3, 1).
    raw = raw4.reshape(B, 2, h, w).transpose(0, 2, 3, 1)     # (B, h, w, 2)
    pix = pix4.reshape(B, 2, h, w).transpose(0, 2, 3, 1)     # (B, h, w, 2)
    return pix, raw


def project3d_ref(points, k, tform, size, eps=1e-7):
    # Pure-JAX reference mirroring the PyTorch forward.
    h, w = size
    p = jnp.matmul(k, tform)[:, :3, :]
    cam = jnp.matmul(p, points)
    raw = cam[:, :2, :] / (cam[:, 2:3, :] + eps)
    raw = raw.reshape(-1, 2, h, w).transpose(0, 2, 3, 1)
    pix = raw.at[..., 0].divide(w - 1)
    pix = pix.at[..., 1].divide(h - 1)
    pix = (pix - 0.5) * 2.0
    return pix, raw


if __name__ == "__main__":
    key = jax.random.PRNGKey(0)
    k_pts, k_k, k_t = jax.random.split(key, 3)

    B, h, w = 2, 16, 16
    N = h * w

    # Homogeneous points with strictly positive depth so the division is
    # well-conditioned (z row >= 1).
    xyz = jax.random.normal(k_pts, (B, 3, N), dtype=jnp.float32)
    z = jnp.abs(xyz[:, 2:3, :]) + 1.0
    points = jnp.concatenate(
        [xyz[:, :2, :], z, jnp.ones((B, 1, N), jnp.float32)], axis=1)   # (B,4,N)

    eye = jnp.eye(4, dtype=jnp.float32)[None]
    k_mat = eye + 0.05 * jax.random.normal(k_k, (B, 4, 4), dtype=jnp.float32)
    tform = eye + 0.05 * jax.random.normal(k_t, (B, 4, 4), dtype=jnp.float32)

    pix, raw = project3d(points, k_mat, tform, (h, w))
    jax.block_until_ready((pix, raw))

    pix_r, raw_r = project3d_ref(points, k_mat, tform, (h, w))
    assert pix.shape == (B, h, w, 2) and raw.shape == (B, h, w, 2)
    assert jnp.allclose(pix, pix_r, atol=1e-4, rtol=1e-4)
    assert jnp.allclose(raw, raw_r, atol=1e-4, rtol=1e-4)

    print("KERNEL_OK")
</pallas_src>

<mosaic_0001>
module attributes {stable_mosaic.version = 11 : i64} {
  func.func @_project3d_kernel(%arg0: i32, %arg1: i32, %arg2: memref<2x12xf32, #tpu.memory_space<smem>>, %arg3: memref<1x4x2x128xf32, #tpu.memory_space<vmem>>, %arg4: memref<1x2x2x128xf32, #tpu.memory_space<vmem>>, %arg5: memref<1x2x2x128xf32, #tpu.memory_space<vmem>>) attributes {dimension_semantics = [#tpu.dimension_semantics<parallel>, #tpu.dimension_semantics<parallel>], iteration_bounds = array<i64: 2, 1>, scalar_prefetch = 1 : i64, scratch_operands = 0 : i64, tpu.core_type = #tpu.core_type<tc>, window_params = [{transform_indices = @transform_0, window_bounds = array<i64: 1, 4, 2, 128>}, {transform_indices = @transform_1, window_bounds = array<i64: 1, 2, 2, 128>}, {transform_indices = @transform_2, window_bounds = array<i64: 1, 2, 2, 128>}]} {
    %c0 = arith.constant 0 : index
    %c0_0 = arith.constant 0 : index
    %c0_1 = arith.constant 0 : index
    %c0_2 = arith.constant 0 : index
    %0 = vector.load %arg3[%c0, %c0_0, %c0_1, %c0_2] : memref<1x4x2x128xf32, #tpu.memory_space<vmem>>, vector<1x1x2x128xf32>
    %1 = vector.shape_cast %0 : vector<1x1x2x128xf32> to vector<2x128xf32>
    %c0_3 = arith.constant 0 : index
    %c1 = arith.constant 1 : index
    %c0_4 = arith.constant 0 : index
    %c0_5 = arith.constant 0 : index
    %2 = vector.load %arg3[%c0_3, %c1, %c0_4, %c0_5] : memref<1x4x2x128xf32, #tpu.memory_space<vmem>>, vector<1x1x2x128xf32>
    %3 = vector.shape_cast %2 : vector<1x1x2x128xf32> to vector<2x128xf32>
    %c0_6 = arith.constant 0 : index
    %c2 = arith.constant 2 : index
    %c0_7 = arith.constant 0 : index
    %c0_8 = arith.constant 0 : index
    %4 = vector.load %arg3[%c0_6, %c2, %c0_7, %c0_8] : memref<1x4x2x128xf32, #tpu.memory_space<vmem>>, vector<1x1x2x128xf32>
    %5 = vector.shape_cast %4 : vector<1x1x2x128xf32> to vector<2x128xf32>
    %c0_9 = arith.constant 0 : index
    %c3 = arith.constant 3 : index
    %c0_10 = arith.constant 0 : index
    %c0_11 = arith.constant 0 : index
    %6 = vector.load %arg3[%c0_9, %c3, %c0_10, %c0_11] : memref<1x4x2x128xf32, #tpu.memory_space<vmem>>, vector<1x1x2x128xf32>
    %7 = vector.shape_cast %6 : vector<1x1x2x128xf32> to vector<2x128xf32>
    %8 = arith.index_cast %arg0 : i32 to index
    %c0_12 = arith.constant 0 : index
    %9 = memref.load %arg2[%8, %c0_12] : memref<2x12xf32, #tpu.memory_space<smem>>
    %10 = vector.broadcast %9 : f32 to vector<2x128xf32>
    %11 = arith.mulf %10, %1 : vector<2x128xf32>
    %12 = arith.index_cast %arg0 : i32 to index
    %c1_13 = arith.constant 1 : index
    %13 = memref.load %arg2[%12, %c1_13] : memref<2x12xf32, #tpu.memory_space<smem>>
    %14 = vector.broadcast %13 : f32 to vector<2x128xf32>
    %15 = arith.mulf %14, %3 : vector<2x128xf32>
    %16 = arith.addf %11, %15 : vector<2x128xf32>
    %17 = arith.index_cast %arg0 : i32 to index
    %c2_14 = arith.constant 2 : index
    %18 = memref.load %arg2[%17, %c2_14] : memref<2x12xf32, #tpu.memory_space<smem>>
    %19 = vector.broadcast %18 : f32 to vector<2x128xf32>
    %20 = arith.mulf %19, %5 : vector<2x128xf32>
    %21 = arith.addf %16, %20 : vector<2x128xf32>
    %22 = arith.index_cast %arg0 : i32 to index
    %c3_15 = arith.constant 3 : index
    %23 = memref.load %arg2[%22, %c3_15] : memref<2x12xf32, #tpu.memory_space<smem>>
    %24 = vector.broadcast %23 : f32 to vector<2x128xf32>
    %25 = arith.mulf %24, %7 : vector<2x128xf32>
    %26 = arith.addf %21, %25 : vector<2x128xf32>
    %27 = arith.index_cast %arg0 : i32 to index
    %c4 = arith.constant 4 : index
    %28 = memref.load %arg2[%27, %c4] : memref<2x12xf32, #tpu.memory_space<smem>>
    %29 = vector.broadcast %28 : f32 to vector<2x128xf32>
    %30 = arith.mulf %29, %1 : vector<2x128xf32>
    %31 = arith.index_cast %arg0 : i32 to index
    %c5 = arith.constant 5 : index
    %32 = memref.load %arg2[%31, %c5] : memref<2x12xf32, #tpu.memory_space<smem>>
    %33 = vector.broadcast %32 : f32 to vector<2x128xf32>
    %34 = arith.mulf %33, %3 : vector<2x128xf32>
    %35 = arith.addf %30, %34 : vector<2x128xf32>
    %36 = arith.index_cast %arg0 : i32 to index
    %c6 = arith.constant 6 : index
    %37 = memref.load %arg2[%36, %c6] : memref<2x12xf32, #tpu.memory_space<smem>>
    %38 = vector.broadcast %37 : f32 to vector<2x128xf32>
    %39 = arith.mulf %38, %5 : vector<2x128xf32>
    %40 = arith.addf %35, %39 : vector<2x128xf32>
    %41 = arith.index_cast %arg0 : i32 to index
    %c7 = arith.constant 7 : index
    %42 = memref.load %arg2[%41, %c7] : memref<2x12xf32, #tpu.memory_space<smem>>
    %43 = vector.broadcast %42 : f32 to vector<2x128xf32>
    %44 = arith.mulf %43, %7 : vector<2x128xf32>
    %45 = arith.addf %40, %44 : vector<2x128xf32>
    %46 = arith.index_cast %arg0 : i32 to index
    %c8 = arith.constant 8 : index
    %47 = memref.load %arg2[%46, %c8] : memref<2x12xf32, #tpu.memory_space<smem>>
    %48 = vector.broadcast %47 : f32 to vector<2x128xf32>
    %49 = arith.mulf %48, %1 : vector<2x128xf32>
    %50 = arith.index_cast %arg0 : i32 to index
    %c9 = arith.constant 9 : index
    %51 = memref.load %arg2[%50, %c9] : memref<2x12xf32, #tpu.memory_space<smem>>
    %52 = vector.broadcast %51 : f32 to vector<2x128xf32>
    %53 = arith.mulf %52, %3 : vector<2x128xf32>
    %54 = arith.addf %49, %53 : vector<2x128xf32>
    %55 = arith.index_cast %arg0 : i32 to index
    %c10 = arith.constant 10 : index
    %56 = memref.load %arg2[%55, %c10] : memref<2x12xf32, #tpu.memory_space<smem>>
    %57 = vector.broadcast %56 : f32 to vector<2x128xf32>
    %58 = arith.mulf %57, %5 : vector<2x128xf32>
    %59 = arith.addf %54, %58 : vector<2x128xf32>
    %60 = arith.index_cast %arg0 : i32 to index
    %c11 = arith.constant 11 : index
    %61 = memref.load %arg2[%60, %c11] : memref<2x12xf32, #tpu.memory_space<smem>>
    %62 = vector.broadcast %61 : f32 to vector<2x128xf32>
    %63 = arith.mulf %62, %7 : vector<2x128xf32>
    %64 = arith.addf %59, %63 : vector<2x128xf32>
    %cst = arith.constant 1.000000e-07 : f32
    %65 = vector.broadcast %cst : f32 to vector<2x128xf32>
    %66 = arith.addf %64, %65 : vector<2x128xf32>
    %cst_16 = arith.constant 1.000000e+00 : f32
    %67 = vector.broadcast %cst_16 : f32 to vector<2x128xf32>
    %68 = arith.divf %67, %66 : vector<2x128xf32>
    %69 = arith.mulf %26, %68 : vector<2x128xf32>
    %70 = arith.mulf %45, %68 : vector<2x128xf32>
    %c0_17 = arith.constant 0 : index
    %c0_18 = arith.constant 0 : index
    %c0_19 = arith.constant 0 : index
    %c0_20 = arith.constant 0 : index
    %71 = vector.load %arg5[%c0_17, %c0_18, %c0_19, %c0_20] : memref<1x2x2x128xf32, #tpu.memory_space<vmem>>, vector<1x1x2x128xf32>
    %72 = vector.shape_cast %71 : vector<1x1x2x128xf32> to vector<2x128xf32>
    %73 = vector.shape_cast %69 : vector<2x128xf32> to vector<1x1x2x128xf32>
    tpu.vector_store %arg5[%c0_17, %c0_18, %c0_19, %c0_20], %73 {strides = array<i32>} : memref<1x2x2x128xf32, #tpu.memory_space<vmem>>, vector<1x1x2x128xf32>,
    %c0_21 = arith.constant 0 : index
    %c1_22 = arith.constant 1 : index
    %c0_23 = arith.constant 0 : index
    %c0_24 = arith.constant 0 : index
    %74 = vector.load %arg5[%c0_21, %c1_22, %c0_23, %c0_24] : memref<1x2x2x128xf32, #tpu.memory_space<vmem>>, vector<1x1x2x128xf32>
    %75 = vector.shape_cast %74 : vector<1x1x2x128xf32> to vector<2x128xf32>
    %76 = vector.shape_cast %70 : vector<2x128xf32> to vector<1x1x2x128xf32>
    tpu.vector_store %arg5[%c0_21, %c1_22, %c0_23, %c0_24], %76 {strides = array<i32>} : memref<1x2x2x128xf32, #tpu.memory_space<vmem>>, vector<1x1x2x128xf32>,
    %cst_25 = arith.constant 0.13333334 : f32
    %77 = vector.broadcast %cst_25 : f32 to vector<2x128xf32>
    %78 = arith.mulf %69, %77 : vector<2x128xf32>
    %cst_26 = arith.constant 1.000000e+00 : f32
    %79 = vector.broadcast %cst_26 : f32 to vector<2x128xf32>
    %80 = arith.subf %78, %79 : vector<2x128xf32>
    %c0_27 = arith.constant 0 : index
    %c0_28 = arith.constant 0 : index
    %c0_29 = arith.constant 0 : index
    %c0_30 = arith.constant 0 : index
    %81 = vector.load %arg4[%c0_27, %c0_28, %c0_29, %c0_30] : memref<1x2x2x128xf32, #tpu.memory_space<vmem>>, vector<1x1x2x128xf32>
    %82 = vector.shape_cast %81 : vector<1x1x2x128xf32> to vector<2x128xf32>
    %83 = vector.shape_cast %80 : vector<2x128xf32> to vector<1x1x2x128xf32>
    tpu.vector_store %arg4[%c0_27, %c0_28, %c0_29, %c0_30], %83 {strides = array<i32>} : memref<1x2x2x128xf32, #tpu.memory_space<vmem>>, vector<1x1x2x128xf32>,
    %cst_31 = arith.constant 0.13333334 : f32
    %84 = vector.broadcast %cst_31 : f32 to vector<2x128xf32>
    %85 = arith.mulf %70, %84 : vector<2x128xf32>
    %cst_32 = arith.constant 1.000000e+00 : f32
    %86 = vector.broadcast %cst_32 : f32 to vector<2x128xf32>
    %87 = arith.subf %85, %86 : vector<2x128xf32>
    %c0_33 = arith.constant 0 : index
    %c1_34 = arith.constant 1 : index
    %c0_35 = arith.constant 0 : index
    %c0_36 = arith.constant 0 : index
    %88 = vector.load %arg4[%c0_33, %c1_34, %c0_35, %c0_36] : memref<1x2x2x128xf32, #tpu.memory_space<vmem>>, vector<1x1x2x128xf32>
    %89 = vector.shape_cast %88 : vector<1x1x2x128xf32> to vector<2x128xf32>
    %90 = vector.shape_cast %87 : vector<2x128xf32> to vector<1x1x2x128xf32>
    tpu.vector_store %arg4[%c0_33, %c1_34, %c0_35, %c0_36], %90 {strides = array<i32>} : memref<1x2x2x128xf32, #tpu.memory_space<vmem>>, vector<1x1x2x128xf32>,
    return
  }
  func.func @transform_0(%arg0: i32, %arg1: i32, %arg2: memref<2x12xf32, #tpu.memory_space<smem>>) -> (i32, i32, i32, i32) {
    %c0_i32 = arith.constant 0 : i32
    %c0_i32_0 = arith.constant 0 : i32
    %c0_i32_1 = arith.constant 0 : i32
    return %arg0, %c0_i32, %arg1, %c0_i32_0 : i32, i32, i32, i32
  }
  func.func @transform_1(%arg0: i32, %arg1: i32, %arg2: memref<2x12xf32, #tpu.memory_space<smem>>) -> (i32, i32, i32, i32) {
    %c0_i32 = arith.constant 0 : i32
    %c0_i32_0 = arith.constant 0 : i32
    %c0_i32_1 = arith.constant 0 : i32
    return %arg0, %c0_i32, %arg1, %c0_i32_0 : i32, i32, i32, i32
  }
  func.func @transform_2(%arg0: i32, %arg1: i32, %arg2: memref<2x12xf32, #tpu.memory_space<smem>>) -> (i32, i32, i32, i32) {
    %c0_i32 = arith.constant 0 : i32
    %c0_i32_0 = arith.constant 0 : i32
    %c0_i32_1 = arith.constant 0 : i32
    return %arg0, %c0_i32, %arg1, %c0_i32_0 : i32, i32, i32, i32
  }
}

</mosaic_0001>

<bundles_post_ra>
// kernel: tpu_custom_call.1
= control target key start
LH: loop header
LB: loop body
LE: loop exit
PB: predicated region body
PF: predicated region fallthrough
CT: control target
= control target key end

     0   :  { %s982_s0 = inlined_call_operand.hbm [shape: f32[2,12], index: 0, kind: input, shape index: {}]   ;;  %s983_s1 = inlined_call_operand.hbm [shape: f32[2,4,2,128], index: 1, kind: input, shape index: {}]   ;;  %s984_s2 = inlined_call_operand.hbm [shape: f32[2,2,2,128], index: 2, kind: output, shape index: {0}]   ;;  %s985_s3 = inlined_call_operand.hbm [shape: f32[2,2,2,128], index: 3, kind: output, shape index: {1}]  }
   0x1   :  { %987 = sst [smem:[#allocation14_spill]] %s983_s1  ;;  %s536_s14 = scalar_lea.hbm %s982_s0, 32 }
   0x2   :  { %p537_p0 = scmp.ne.s32.totalorder %s982_s0, %s536_s14  ;;  %p540_p1 = scmp.lt.u32.totalorder %s536_s14, %s982_s0 }
   0x4   :  { %p542_p2 = pnand %p540_p1, %p537_p0 }
   0x6   :  { %545 = shalt.err (!%p542_p2)  }
   0x7   :  { %s694_s19 = smov [#allocation3]  }
   0x8   :  { %10 = dma.hbm_to_smem %s982_s0, 32, %s694_s19, [#allocation2] }
   0x9   :  { %656 = dma.done.wait [#allocation2], 32 }
   0xa   :  { %657 = vsyncadd [#allocation2], 4294967264 }
   0xb   :  { %12 = sfence }
   0xc   :  { %13 = vsyncpa [#allocation5], 0 }
   0xd   :  { %15 = vsyncpa [#allocation5 + $0x1], 0 }
   0xe   :  { %16 = vsyncpa [#allocation6], 0 }
   0xf   :  { %18 = vsyncpa [#allocation6 + $0x1], 0 }
  0x10   :  { %19 = vsyncpa [#allocation9], 0 }
  0x11   :  { %21 = vsyncpa [#allocation9 + $0x1], 0  ;;  %s734_s22 = smov 0   ;;  %s736_s23 = smov 0  }
  0x12   :  { %s738_s24 = smov 0   ;;  %s740_s25 = smov 0  }
  0x13   :  { %s742_s26 = smov 0   ;;  %s744_s0 = smov 0  }
  0x14 LB: > { %s432_s27 = sadd.s32 4294967295, %s692_s0   ;;  %s433_s28 = sadd.s32 4294967294, %s692_s0   ;;  %s692_s0 = sphi %s744_s0, %s27_s0   ;;  %s688_s26 = sphi %s742_s26, %s1002_s26   ;;  %s684_s25 = sphi %s740_s25, %s1001_s25   ;;  %s680_s24 = sphi %s738_s24, %s1000_s24   ;;  %s676_s23 = sphi %s736_s23, %s999_s23   ;;  %s672_s22 = sphi %s734_s22, %s998_s22  }
  0x15   : > { %s39_s29 = sadd.s32 1, %s688_s26  ;;  %s48_s30 = sadd.s32 1, %s680_s24 }
  0x16   : > { %p41_p3 = scmp.ge.s32.totalorder %s39_s29, 2  ;;  %p55_p4 = scmp.ne.s32.totalorder %s680_s24, %s676_s23 }
  0x17   : > { %p56_p5 = scmp.eq.s32.totalorder %s692_s0, 0  ;;  %p61_p6 = scmp.ne.s32.totalorder %s676_s23, %s672_s22 }
  0x18   : > { %s1004_s29 = smov (%p41_p3, %s39_s29), 0  ;;  %p62_p8 = scmp.eq.s32.totalorder %s432_s27, 0 }
  0x19   : > { %p775_p7 = por %p56_p5, %p55_p4  ;;  %s43_s5 = ssub.s32 %s688_s26, %s1004_s29 }
  0x1a   : > { %p87_p9 = scmp.eq.s32.totalorder %s432_s27, 1  ;;  %p46_p10 = scmp.eq.s32.totalorder %s43_s5, 0 }
  0x1b   : > { %p781_p11 = por %p62_p8, %p61_p6  ;;  %p93_p13 = scmp.eq.s32.totalorder %s433_s28, 1 }
  0x1c   : > { %p785_p12 = por %p87_p9, %p55_p4  ;;  %p479_p2 = scmp.lt.s32.totalorder %s692_s0, 2 }
  0x1d   : > { %s790_s8 = scalar_select %p46_p10, %s680_s24, %s48_s30  }
  0x1e   : > { %s990_s7 = scalar_select %p785_p12, 1, 0 }
  0x1f   : > { %p792_p0 = por %p93_p13, %p61_p6  ;;  %s141_s10 = sand.u32 1, %s680_s24  }
  0x20   : > { %s436_s11 = sshll.u32 %s141_s10, 3  ;;  %s459_s12 = sshll.u32 %s688_s26, 7 }
  0x21   : > { %s991_s9 = scalar_select %p792_p0, 1, 0 }
  0x22   : > { %s992_s1 = sld [smem:[#allocation14_spill]]  ;;  %s145_s16 = scalar_lea.vmem [#allocation4], %s436_s11 }
  0x23   : > { %s153_s17 = sshll.u32 %s145_s16, 4  ;;  %p809_p3 = pnand %p479_p2, %p775_p7  ;;  %s805_s17 = int_to_ptr.vmem [resolvable:$true] %s153_s17 }
  0x24   : > { %s814_s19 = scalar_lea.sflag [#allocation5], %s141_s10 }
  0x25   : > { %p548_p6 = pneg %p809_p3 }
  0x28   : > { %s803_s15 = scalar_lea.hbm %s992_s1, %s459_s12  ;;  %s551_s28 = scalar_lea.hbm %s992_s1, 256 }
  0x29   : > { %s546_s20 = scalar_lea.hbm %s803_s15, 128  ;;  %p552_p7 = scmp.lt.u32.totalorder %s803_s15, %s992_s1 }
  0x2a   : > { %p547_p5 = scmp.ne.s32.totalorder %s803_s15, %s546_s20  ;;  %p553_p10 = scmp.lt.u32.totalorder %s551_s28, %s546_s20 }
  0x2b   : > { %p555_p2 = scmp.lt.u32.totalorder %s546_s20, %s803_s15 }
  0x2c   : > { %p549_p8 = pnand %p548_p6, %p547_p5  ;;  %p554_p13 = por %p553_p10, %p552_p7 }
  0x2e   : > { %p550_p9 = pneg %p549_p8  ;;  %p556_p1 = por %p555_p2, %p554_p13 }
  0x30   : > { %p557_p4 = pnand %p556_p1, %p550_p9 }
  0x32   : > { %560 = shalt.err (!%p557_p4)
}
  0x33   : > { %s561_s5 = scalar_lea.vmem %s805_s17, 128  ;;  %s695_s10 = smov [#allocation4]  }
  0x34   : > { %p562_p5 = scmp.ne.s32.totalorder %s805_s17, %s561_s5  ;;  %s566_s11 = sshll.u32 %s695_s10, 4  ;;  %s567_s11 = int_to_ptr.vmem [resolvable:$false] %s566_s11 }
  0x35   : > { %s568_s12 = scalar_lea.vmem %s567_s11, 256  ;;  %p569_p12 = scmp.lt.s32.totalorder %s805_s17, %s567_s11 }
  0x36   : > { %p564_p8 = pnand %p562_p5, %p548_p6  ;;  %p570_p7 = scmp.lt.s32.totalorder %s568_s12, %s561_s5 }
  0x38   : > { %p565_p0 = pneg %p564_p8  ;;  %p571_p10 = por %p570_p7, %p569_p12 }
  0x3a   : > { %p572_p13 = pnand %p571_p10, %p565_p0 }
  0x3c   : > { %575 = shalt.err (!%p572_p13)
}
  0x3d   : > { %s696_s13 = smov 32   ;;  %s697_s14 = smov 2  }
  0x3e   : > { %471 = dma.hbm_to_vmem [thread:$0]  (!%p809_p3), %s803_s15, 128, %s805_s17, %s814_s19, %s696_s13, %s696_s13, %s697_s14  }
  0x3f   : > { %p161_p1 = scmp.lt.s32.totalorder %s692_s0, 3  ;;  %p994_p4 = scmp.ge.s32.totalorder %s692_s0, 1 }
  0x41   : > { %p162_p6 = pnand %p994_p4, %p161_p1 }
  0x42   : > { %s846_s16 = sand.u32 (!%p162_p6), 1, %s676_s23  }
  0x43   : > { %165 = sbr.rel (%p162_p6) target bundleno = 148 (0x94), region = 24  ;;  %s440_s20 = sshll.u32 (!%p162_p6), %s846_s16, 3 }
  0x44   : > { %s168_s21 = scalar_lea.sflag (!%p162_p6), [#allocation5], %s846_s16  ;;  %s171_s27 = scalar_lea.vmem (!%p162_p6), [#allocation4], %s440_s20 }
  0x4a   : > { %659 = dma.done.wait (%p781_p11), %s168_s21, 128  }
  0x4b   : > { %661 = vsyncadd (%p781_p11), %s168_s21, 4294967168  ;;  %s855_s15 = sshll.u32 %s684_s25, 7  ;;  %v197_v0 = vld [vmem:[%s171_s27] sm:$0x3]  ;;  %v443_v2 = vld [vmem:[%s171_s27 + $0x2] sm:$0x3] }
  0x4c   : > { %s242_s17 = sadd.s32 8, %s855_s15  ;;  %s208_s18 = sadd.s32 1, %s855_s15  ;;  %v444_v3 = vld [vmem:[%s171_s27 + $0x4] sm:$0x3]  ;;  %v445_v5 = vld [vmem:[%s171_s27 + $0x6] sm:$0x3] }
  0x4d   : > { %s243_s19 = sld [smem:[#allocation3 + %s242_s17]]  ;;  %s246_s28 = sadd.s32 9, %s855_s15 }
  0x4e   : > { %s251_s30 = sadd.s32 10, %s855_s15  ;;  %s862_s4 = sld [smem:[#allocation3 + %s855_s15]] }
  0x4f   : > { %s213_s6 = sadd.s32 2, %s855_s15  ;;  %s247_s5 = sld [smem:[#allocation3 + %s246_s28]] }
  0x50   : > { %s252_s10 = sld [smem:[#allocation3 + %s251_s30]]  ;;  %s256_s12 = sadd.s32 11, %s855_s15 }
  0x51   : > { %s865_s11 = sld [smem:[#allocation3 + %s208_s18]]  ;;  %s223_s20 = sadd.s32 4, %s855_s15 }
  0x52   : > { %s868_s13 = sld [smem:[#allocation3 + %s213_s6]]  ;;  %s227_s21 = sadd.s32 5, %s855_s15 }
  0x53   : > { %s257_s14 = sld [smem:[#allocation3 + %s256_s12]]  ;;  %v244_v1 = vstv %s243_s19  ;;  %s218_s28 = sadd.s32 3, %s855_s15 }
  0x54   : > { %s224_s17 = sld [smem:[#allocation3 + %s223_s20]]  ;;  %v245_v4 = vmul.f32 %v244_v1, %v197_v0  ;;  %s232_s30 = sadd.s32 6, %s855_s15  ;;  %v206_v11 = vstv %s862_s4 }
  0x55   : > { %s228_s1 = sld [smem:[#allocation3 + %s227_s21]]  ;;  %v248_v6 = vstv %s247_s5  ;;  %s237_s6 = sadd.s32 7, %s855_s15  ;;  %v207_v18 = vmul.f32 %v206_v11, %v197_v0 }
  0x56   : > { %v253_v7 = vstv %s252_s10  ;;  %s233_s18 = sld [smem:[#allocation3 + %s232_s30]]  ;;  %v249_v8 = vmul.f32 %v443_v2, %v248_v6  ;;  %s441_s27 = sshll.u32 %s846_s16, 2 }
  0x57   : > { %v254_v9 = vmul.f32 %v444_v3, %v253_v7  ;;  %v210_v12 = vstv %s865_s11  ;;  %s219_s19 = sld [smem:[#allocation3 + %s218_s28]]  ;;  %s460_s4 = sshll.u32 %s684_s25, 6 }
  0x58   : > { %v250_v13 = vadd.f32 %v249_v8, %v245_v4  ;;  %s238_s12 = sld [smem:[#allocation3 + %s237_s6]]  ;;  %v211_v19 = vmul.f32 %v443_v2, %v210_v12  ;;  %v215_v22 = vstv %s868_s13  ;;  %s887_s11 = scalar_lea.hbm %s985_s3, %s460_s4 }
  0x59   : > { %v258_v10 = vstv %s257_s14  ;;  %v216_v27 = vmul.f32 %v444_v3, %v215_v22  ;;  %s889_s13 = scalar_lea.vmem [#allocation7], %s441_s27  ;;  %s282_s20 = scalar_lea.sflag [#allocation9], %s846_s16 }
  0x5a   : > { %v259_v14 = vmul.f32 %v445_v5, %v258_v10  ;;  %v225_v15 = vstv %s224_s17  ;;  %v255_v17 = vadd.f32 %v254_v9, %v250_v13  ;;  %v212_v26 = vadd.f32 %v211_v19, %v207_v18  ;;  %s296_s14 = sshll.u32 %s889_s13, 4  ;;  %p995_p12 = scmp.ne.s32.totalorder %s990_s7, 0  ;;  %s921_s14 = int_to_ptr.vmem [resolvable:$true] %s296_s14 }
  0x5b   : > { %v229_v16 = vstv %s228_s1  ;;  %v226_v20 = vmul.f32 %v225_v15, %v197_v0  ;;  %s196_s1 = scalar_lea.vmem [#allocation8], %s441_s27  ;;  %s698_s17 = smov [#allocation8]  }
  0x5c   : > { %v230_v21 = vmul.f32 %v443_v2, %v229_v16  ;;  %v260_v23 = vadd.f32 %v259_v14, %v255_v17  ;;  %v234_v24 = vstv %s233_s18  ;;  %v217_v32 = vadd.f32 %v216_v27, %v212_v26  ;;  %s313_s15 = sshll.u32 %s196_s1, 4  ;;  %s580_s28 = sshll.u32 %s698_s17, 4  ;;  %s880_s15 = int_to_ptr.vmem [resolvable:$true] %s313_s15  ;;  %s581_s28 = int_to_ptr.vmem [resolvable:$false] %s580_s28 }
  0x5d   : > { %v235_v29 = vmul.f32 %v444_v3, %v234_v24  ;;  %v220_v30 = vstv %s219_s19  ;;  %s576_s21 = scalar_lea.vmem %s880_s15, 64  ;;  %s582_s30 = scalar_lea.vmem %s581_s28, 128 }
  0x5e   : > { %v261_v25 = vadd.f32 1e-07, %v260_v23  ;;  %v231_v28 = vadd.f32 %v230_v21, %v226_v20  ;;  %v239_v31 = vstv %s238_s12  ;;  %v221_v33 = vmul.f32 %v445_v5, %v220_v30  ;;  %p577_p11 = scmp.ne.s32.totalorder %s880_s15, %s576_s21  ;;  %p583_p9 = scmp.lt.s32.totalorder %s880_s15, %s581_s28 }
  0x5f   : > { %v240_v35 = vmul.f32 %v445_v5, %v239_v31  ;;  %p584_p2 = scmp.lt.s32.totalorder %s582_s30, %s576_s21 }
  0x60   : > { %534 = vrcp.f32 %v261_v25  ;;  %v236_v34 = vadd.f32 %v235_v29, %v231_v28  ;;  %v222_v36 = vadd.f32 %v221_v33, %v217_v32  ;;  %p578_p0 = pnand %p577_p11, %p995_p12 }
  0x61   : > { %p585_p5 = por %p584_p2, %p583_p9 }
  0x62   : > { %v241_v37 = vadd.f32 %v240_v35, %v236_v34  ;;  %p579_p3 = pneg %p578_p0 }
  0x64   : > { %p586_p8 = pnand %p585_p5, %p579_p3 }
  0x6a   : > { %v535_v38 = vpop.eup %534 }
  0x6b   : > { %v264_v39 = vmul.f32 %v535_v38, %v222_v36  ;;  %v265_v40 = vmul.f32 %v535_v38, %v241_v37 }
  0x6d   : > { %266 = vst [vmem:[%s196_s1] sm:$0x3] %v264_v39  ;;  %447 = vst [vmem:[%s196_s1 + $0x2] sm:$0x3] %v265_v40  ;;  %v269_v41 = vmul.f32 0.13333334, %v264_v39 }
  0x6e   : > { %v272_v42 = vmul.f32 0.13333334, %v265_v40 }
  0x6f   : > { %589 = shalt.err (!%p586_p8)
}
  0x70   : > { %s590_s18 = scalar_lea.hbm %s887_s11, 64  ;;  %s594_s12 = scalar_lea.hbm %s985_s3, 128 }
  0x71   : > { %p591_p7 = scmp.ne.s32.totalorder %s887_s11, %s590_s18  ;;  %p595_p1 = scmp.lt.u32.totalorder %s887_s11, %s985_s3 }
  0x72   : > { %p596_p4 = scmp.lt.u32.totalorder %s594_s12, %s590_s18  ;;  %p598_p11 = scmp.lt.u32.totalorder %s590_s18, %s887_s11 }
  0x73   : > { %p592_p10 = pnand %p591_p7, %p995_p12 }
  0x74   : > { %p597_p6 = por %p596_p4, %p595_p1 }
  0x75   : > { %p593_p13 = pneg %p592_p10 }
  0x76   : > { %p599_p0 = por %p598_p11, %p597_p6 }
  0x78   : > { %p600_p3 = pnand %p599_p0, %p593_p13 }
  0x7a   : > { %603 = shalt.err (!%p600_p3)
}
  0x7b   : > { %s699_s5 = smov 32   ;;  %s700_s10 = smov 2   ;;  %v448_v43 = vadd.f32 -1.0, %v269_v41  ;;  %v449_v44 = vadd.f32 -1.0, %v272_v42 }
  0x7c   : > { %465 = dma.vmem_to_hbm [thread:$0]  (%p995_p12), %s880_s15, 64, %s887_s11, %s282_s20, %s699_s5, %s699_s5, %s700_s10  }
  0x7d   : > { %s928_s28 = scalar_lea.hbm %s984_s2, %s460_s4  ;;  %271 = vst [vmem:[%s889_s13] sm:$0x3] %v448_v43  ;;  %450 = vst [vmem:[%s889_s13 + $0x2] sm:$0x3] %v449_v44  ;;  %s277_s30 = scalar_lea.sflag [#allocation6], %s846_s16 }
  0x7e   : > { %s604_s18 = scalar_lea.vmem %s921_s14, 64  ;;  %s701_s15 = smov [#allocation7]  }
  0x7f   : > { %p605_p9 = scmp.ne.s32.totalorder %s921_s14, %s604_s18  ;;  %s608_s11 = sshll.u32 %s701_s15, 4  ;;  %s609_s11 = int_to_ptr.vmem [resolvable:$false] %s608_s11 }
  0x80   : > { %s610_s20 = scalar_lea.vmem %s609_s11, 128  ;;  %p611_p8 = scmp.lt.s32.totalorder %s921_s14, %s609_s11 }
  0x81   : > { %p606_p2 = pnand %p605_p9, %p995_p12  ;;  %p612_p7 = scmp.lt.s32.totalorder %s610_s20, %s604_s18 }
  0x83   : > { %p607_p5 = pneg %p606_p2  ;;  %p613_p10 = por %p612_p7, %p611_p8 }
  0x85   : > { %p614_p13 = pnand %p613_p10, %p607_p5 }
  0x87   : > { %617 = shalt.err (!%p614_p13)
}
  0x88   : > { %s618_s25 = scalar_lea.hbm %s928_s28, 64  ;;  %s622_s6 = scalar_lea.hbm %s984_s2, 128 }
  0x89   : > { %p619_p1 = scmp.ne.s32.totalorder %s928_s28, %s618_s25  ;;  %p623_p11 = scmp.lt.u32.totalorder %s928_s28, %s984_s2 }
  0x8a   : > { %p624_p0 = scmp.lt.u32.totalorder %s622_s6, %s618_s25  ;;  %p626_p9 = scmp.lt.u32.totalorder %s618_s25, %s928_s28 }
  0x8b   : > { %p620_p4 = pnand %p619_p1, %p995_p12 }
  0x8c   : > { %p625_p3 = por %p624_p0, %p623_p11 }
  0x8d   : > { %p621_p6 = pneg %p620_p4 }
  0x8e   : > { %p627_p2 = por %p626_p9, %p625_p3 }
  0x90   : > { %p628_p5 = pnand %p627_p2, %p621_p6 }
  0x92   : > { %631 = shalt.err (!%p628_p5)
}
  0x93   : > { %464 = dma.vmem_to_hbm [thread:$0]  (%p995_p12), %s921_s14, 64, %s928_s28, %s277_s30, %s699_s5, %s699_s5, %s700_s10  }
  0x94 PF: > { %s328_s27 = sand.u32 1, %s672_s22   ;;  %p996_p8 = scmp.ne.s32.totalorder %s991_s9, 0 }
  0x95   : > { %p997_p7 = scmp.ge.s32.totalorder %s692_s0, 2  ;;  %s329_s1 = scalar_lea.sflag [#allocation6], %s328_s27 }
  0x97   : > { %p473_p10 = pnand %p997_p7, %p996_p8 }
  0x99   : > { %663 = dma.done.wait (!%p473_p10), %s329_s1, 64  }
  0x9a   : > { %665 = vsyncadd (!%p473_p10), %s329_s1, 4294967232  ;;  %s338_s7 = scalar_lea.sflag [#allocation9], %s328_s27 }
  0x9b   : > { %667 = dma.done.wait (!%p473_p10), %s338_s7, 64  }
  0x9c   : > { %669 = vsyncadd (!%p473_p10), %s338_s7, 4294967232  ;;  %s27_s0 = sadd.s32 1, %s692_s0   ;;  %s998_s22 = smov %s676_s23 }
  0x9d   : > { %p24_p13 = scmp.ge.s32.totalorder %s27_s0, 4   ;;  %s999_s23 = smov %s680_s24 }
  0x9e   : > { %s1000_s24 = smov %s790_s8  ;;  %s1001_s25 = smov %s688_s26 }
  0x9f   : > { %s1002_s26 = smov %s1004_s29  ;;  %26 = sbr.rel (!%p24_p13) target bundleno = 20 (0x14), region = 91 }
  0xa6   :  { %343 = vsyncpa [#allocation5], 1 }
  0xa7   :  { %345 = vsyncpa [#allocation5 + $0x1], 1 }
  0xa8   :  { %346 = vsyncpa [#allocation6], 1 }
  0xa9   :  { %348 = vsyncpa [#allocation6 + $0x1], 1 }
  0xaa   :  { %349 = vsyncpa [#allocation9], 1 }
  0xab   :  { %351 = vsyncpa [#allocation9 + $0x1], 1 }

</bundles_post_ra>
